<compile_context>
chip_gen: v7x
topology: tpu7x:2x2x1
jax: 0.10.0
libtpu: 0.0.40
codegen_flags: <defaults>
</compile_context>

<pallas_src>
import functools

import jax
import jax.numpy as jnp
from jax.experimental import pallas as pl
from jax.experimental.pallas import tpu as pltpu

LANES = 128
MAX_TILE_ROWS = 2048               # 2048 x 128 f32 = 1 MiB per pipeline buffer
VMEM_LIMIT_BYTES = 32 * 1024 * 1024


def _cdiv(a, b):
    return -(-a // b)


def _round_up(x, m):
    return _cdiv(x, m) * m


def _min_sublane(dtype):
    # Native sublane tile: 8 rows for 32-bit, 16 for 16-bit, 32 for 8-bit.
    itemsize = jnp.dtype(dtype).itemsize
    return max(8, 8 * (4 // itemsize))


def _num_tensorcores():
    # v7x has 2 TensorCores per chip sharing HBM; v5e / v6e have 1.
    try:
        dev = jax.devices()[0]
        if dev.platform != "tpu":
            return 1
        kind = dev.device_kind.lower()
        if "v7" in kind or "7x" in kind:
            return 2
    except Exception:
        pass
    return 1


def _hinge_kernel(steps_per_split, tile_rows, valid_rows, needs_edge_mask,
                  has_weight, *refs):
    # refs: (out_ref, lab_ref[, w_ref], o_ref)
    if has_weight:
        out_ref, lab_ref, w_ref, o_ref = refs
    else:
        out_ref, lab_ref, o_ref = refs
        w_ref = None

    p = pl.program_id(0)   # parallel split (TensorCore on v7x)
    i = pl.program_id(1)   # reduction steps within the split

    # Output block (8,128) is the same for every i -> resident accumulator.
    @pl.when(i == 0)
    def _():
        o_ref[...] = jnp.zeros_like(o_ref)

    x = out_ref[...].astype(jnp.float32)
    y = lab_ref[...].astype(jnp.float32) * 2.0 - 1.0
    loss = jnp.maximum(1.0 - x * y, 0.0)
    if w_ref is not None:
        loss = loss * w_ref[...].astype(jnp.float32)

    def _accumulate(vals):
        # Collapse (tile_rows, 128) -> (8, 128) with leading-dim vector adds
        # (values are already in vregs), then one RMW of the 1-vreg accumulator.
        o_ref[...] += vals.reshape(tile_rows // 8, 8, LANES).sum(axis=0)

    if needs_edge_mask:
        blk_row0 = (p * steps_per_split + i) * tile_rows
        is_full = blk_row0 + tile_rows <= valid_rows

        @pl.when(is_full)
        def _():
            _accumulate(loss)

        @pl.when(jnp.logical_not(is_full))
        def _():
            # Row-level boundary mask (no flat int32 index -> no overflow);
            # only the boundary/overhang tile pays for the iota + select.
            row = jax.lax.broadcasted_iota(
                jnp.int32, (tile_rows, LANES), 0) + blk_row0
            _accumulate(jnp.where(row < valid_rows, loss, 0.0))
    else:
        _accumulate(loss)


def hinge_loss(outputs, labels, weight=None):
    """Pallas HingeLoss forward. Returns the scalar f32 mean hinge loss."""
    assert outputs.shape == labels.shape
    n_total = int(outputs.size)
    assert n_total > 0

    out_flat = jnp.ravel(outputs)                  # no-copy reshape
    lab_flat = jnp.ravel(labels)
    if lab_flat.dtype == jnp.bool_:
        lab_flat = lab_flat.astype(jnp.int8)       # narrow 1-byte label stream

    scalar_weight = None
    w_flat = None
    has_weight = False
    if weight is not None:
        w_arr = jnp.asarray(weight)
        if w_arr.size == 1:
            scalar_weight = w_arr                  # applied to the final mean
        else:
            has_weight = True
            if w_arr.shape == outputs.shape:
                w_flat = jnp.ravel(w_arr)
            else:
                # TODO(synk): pass small broadcastable weights through SMEM /
                # a small VMEM block instead of materializing a full stream.
                w_flat = jnp.ravel(jnp.broadcast_to(w_arr, outputs.shape))

    # ---- lane alignment -----------------------------------------------------
    # Common case (n_total % 128 == 0): pure reshape, zero extra HBM traffic.
    # Ragged case: pad ONLY the short tail, with values that make the hinge of
    # the pad exactly zero (outputs=1, labels=1 -> y=1 -> loss=0; weight=0),
    # so no in-kernel masking of the tail is needed.
    rows = _cdiv(n_total, LANES)
    tail = rows * LANES - n_total
    if tail:
        out_flat = jnp.pad(out_flat, (0, tail), constant_values=1)
        lab_flat = jnp.pad(lab_flat, (0, tail), constant_values=1)
        if has_weight:
            w_flat = jnp.pad(w_flat, (0, tail), constant_values=0)

    args = [out_flat.reshape(rows, LANES), lab_flat.reshape(rows, LANES)]
    if has_weight:
        args.append(w_flat.reshape(rows, LANES))

    # ---- tiling / grid ------------------------------------------------------
    granularity = max(_min_sublane(a.dtype) for a in args)
    tile_rows = min(MAX_TILE_ROWS, _round_up(rows, granularity))
    rows_blocks = _cdiv(rows, tile_rows)

    # One parallel split per TensorCore (v7x only); single split on 1-TC chips
    # so no extra round-up / overhang work is created.
    n_split = 2 if (_num_tensorcores() >= 2 and rows_blocks >= 2) else 1
    steps_per_split = _cdiv(rows_blocks, n_split)
    coverage_blocks = n_split * steps_per_split
    needs_edge_mask = coverage_blocks * tile_rows != rows
    last_blk = rows_blocks - 1

    if coverage_blocks > rows_blocks:
        # Grid over-covers by at most one whole block: clamp the DMA block
        # index so it never starts past the array; the kernel's row mask
        # zeroes that block's contribution.
        def in_map(p, i):
            return (jnp.minimum(p * steps_per_split + i, last_blk), 0)
    else:
        def in_map(p, i):
            return (p * steps_per_split + i, 0)

    in_spec = pl.BlockSpec((tile_rows, LANES), in_map)
    out_spec = pl.BlockSpec((8, LANES), lambda p, i: (p, 0))

    kernel = functools.partial(
        _hinge_kernel, steps_per_split, tile_rows, rows, needs_edge_mask,
        has_weight)

    partials = pl.pallas_call(
        kernel,
        out_shape=jax.ShapeDtypeStruct((n_split * 8, LANES), jnp.float32),
        grid_spec=pltpu.PrefetchScalarGridSpec(
            num_scalar_prefetch=0,
            grid=(n_split, steps_per_split),
            in_specs=[in_spec] * len(args),
            out_specs=out_spec,
        ),
        compiler_params=pltpu.CompilerParams(
            dimension_semantics=("parallel", "arbitrary"),
            vmem_limit_bytes=VMEM_LIMIT_BYTES,
        ),
    )(*args)

    mean = jnp.sum(partials) / jnp.float32(n_total)
    if scalar_weight is not None:
        mean = mean * scalar_weight.astype(jnp.float32).reshape(())
    return mean


def hinge_loss_ref(outputs, labels, weight=None):
    outputs = outputs.astype(jnp.float32)
    labels = labels.astype(jnp.float32) * 2.0 - 1.0
    loss = jnp.maximum(1.0 - outputs * labels, 0.0)
    if weight is not None:
        loss = loss * jnp.asarray(weight, jnp.float32)
    return jnp.mean(loss)


if __name__ == "__main__":
    key = jax.random.PRNGKey(0)
    k1, k2, k3, k4, k5 = jax.random.split(key, 5)

    # NCHW-like small shape, consistent with a classifier output map.
    shape = (2, 4, 16, 16)
    outputs = jax.random.normal(k1, shape, dtype=jnp.float32)
    labels = (jax.random.uniform(k2, shape) > 0.5).astype(jnp.float32)

    # Unweighted path.
    got = hinge_loss(outputs, labels)
    jax.block_until_ready(got)
    want = hinge_loss_ref(outputs, labels)
    assert jnp.allclose(got, want, rtol=1e-5, atol=1e-5), (got, want)

    # Scalar weight path (never streamed through HBM).
    got_s = hinge_loss(outputs, labels, weight=0.5)
    jax.block_until_ready(got_s)
    want_s = hinge_loss_ref(outputs, labels, weight=0.5)
    assert jnp.allclose(got_s, want_s, rtol=1e-5, atol=1e-5), (got_s, want_s)

    # Full-size weight tensor path (streamed in original dtype).
    w = jax.random.uniform(k3, shape, dtype=jnp.float32)
    got_w = hinge_loss(outputs, labels, weight=w)
    jax.block_until_ready(got_w)
    want_w = hinge_loss_ref(outputs, labels, weight=w)
    assert jnp.allclose(got_w, want_w, rtol=1e-5, atol=1e-5), (got_w, want_w)

    # Ragged / non-lane-aligned shape: exercises the minimal tail pad (zero-loss
    # pad values) and the boundary-tile row mask.
    shape_r = (2, 3, 17, 31)
    outputs_r = jax.random.normal(k4, shape_r, dtype=jnp.float32)
    labels_r = (jax.random.uniform(k5, shape_r) > 0.5).astype(jnp.float32)
    got_r = hinge_loss(outputs_r, labels_r)
    jax.block_until_ready(got_r)
    want_r = hinge_loss_ref(outputs_r, labels_r)
    assert jnp.allclose(got_r, want_r, rtol=1e-5, atol=1e-5), (got_r, want_r)

    print("KERNEL_OK")
</pallas_src>

<mosaic_0001>
module attributes {stable_mosaic.version = 11 : i64} {
  func.func @_hinge_kernel(%arg0: i32, %arg1: i32, %arg2: memref<16x128xf32, #tpu.memory_space<vmem>>, %arg3: memref<16x128xf32, #tpu.memory_space<vmem>>, %arg4: memref<8x128xf32, #tpu.memory_space<vmem>>) attributes {dimension_semantics = [#tpu.dimension_semantics<parallel>, #tpu.dimension_semantics<arbitrary>], iteration_bounds = array<i64: 1, 1>, scalar_prefetch = 0 : i64, scratch_operands = 0 : i64, tpu.core_type = #tpu.core_type<tc>, window_params = [{transform_indices = @transform_0, window_bounds = array<i64: 16, 128>}, {transform_indices = @transform_1, window_bounds = array<i64: 16, 128>}, {transform_indices = @transform_2, window_bounds = array<i64: 8, 128>}]} {
    %c0_i32 = arith.constant 0 : i32
    %0 = arith.cmpi eq, %arg1, %c0_i32 : i32
    %1 = arith.extui %0 : i1 to i32
    %c0_i32_0 = arith.constant 0 : i32
    %2 = arith.cmpi ne, %1, %c0_i32_0 : i32
    scf.if %2 {
      %cst_12 = arith.constant 0.000000e+00 : f32
      %19 = vector.broadcast %cst_12 : f32 to vector<8x128xf32>
      %c0_13 = arith.constant 0 : index
      %c0_14 = arith.constant 0 : index
      %20 = vector.load %arg4[%c0_13, %c0_14] : memref<8x128xf32, #tpu.memory_space<vmem>>, vector<8x128xf32>
      tpu.vector_store %arg4[%c0_13, %c0_14], %19 {strides = array<i32>} : memref<8x128xf32, #tpu.memory_space<vmem>>, vector<8x128xf32>,
    } else {
    }
    %c0 = arith.constant 0 : index
    %c0_1 = arith.constant 0 : index
    %3 = vector.load %arg2[%c0, %c0_1] : memref<16x128xf32, #tpu.memory_space<vmem>>, vector<16x128xf32>
    %c0_2 = arith.constant 0 : index
    %c0_3 = arith.constant 0 : index
    %4 = vector.load %arg3[%c0_2, %c0_3] : memref<16x128xf32, #tpu.memory_space<vmem>>, vector<16x128xf32>
    %cst = arith.constant 2.000000e+00 : f32
    %5 = vector.broadcast %cst : f32 to vector<16x128xf32>
    %6 = arith.mulf %4, %5 : vector<16x128xf32>
    %cst_4 = arith.constant 1.000000e+00 : f32
    %7 = vector.broadcast %cst_4 : f32 to vector<16x128xf32>
    %8 = arith.subf %6, %7 : vector<16x128xf32>
    %9 = arith.mulf %3, %8 : vector<16x128xf32>
    %cst_5 = arith.constant 1.000000e+00 : f32
    %10 = vector.broadcast %cst_5 : f32 to vector<16x128xf32>
    %11 = arith.subf %10, %9 : vector<16x128xf32>
    %cst_6 = arith.constant 0.000000e+00 : f32
    %12 = vector.broadcast %cst_6 : f32 to vector<16x128xf32>
    %13 = arith.maximumf %11, %12 : vector<16x128xf32>
    %c0_7 = arith.constant 0 : index
    %c0_8 = arith.constant 0 : index
    %14 = vector.load %arg4[%c0_7, %c0_8] : memref<8x128xf32, #tpu.memory_space<vmem>>, vector<8x128xf32>
    %15 = vector.shape_cast %13 : vector<16x128xf32> to vector<2x8x128xf32>
    %cst_9 = arith.constant dense<0.000000e+00> : vector<8x128xf32>
    %16 = vector.multi_reduction <add>, %15, %cst_9 [0] : vector<2x8x128xf32> to vector<8x128xf32>
    %17 = arith.addf %14, %16 : vector<8x128xf32>
    %c0_10 = arith.constant 0 : index
    %c0_11 = arith.constant 0 : index
    %18 = vector.load %arg4[%c0_10, %c0_11] : memref<8x128xf32, #tpu.memory_space<vmem>>, vector<8x128xf32>
    tpu.vector_store %arg4[%c0_10, %c0_11], %17 {strides = array<i32>} : memref<8x128xf32, #tpu.memory_space<vmem>>, vector<8x128xf32>,
    return
  }
  func.func @transform_0(%arg0: i32, %arg1: i32) -> (i32, i32) {
    %c1_i32 = arith.constant 1 : i32
    %0 = arith.muli %arg0, %c1_i32 : i32
    %1 = arith.addi %0, %arg1 : i32
    %c0_i32 = arith.constant 0 : i32
    %c0_i32_0 = arith.constant 0 : i32
    return %1, %c0_i32 : i32, i32
  }
  func.func @transform_1(%arg0: i32, %arg1: i32) -> (i32, i32) {
    %c1_i32 = arith.constant 1 : i32
    %0 = arith.muli %arg0, %c1_i32 : i32
    %1 = arith.addi %0, %arg1 : i32
    %c0_i32 = arith.constant 0 : i32
    %c0_i32_0 = arith.constant 0 : i32
    return %1, %c0_i32 : i32, i32
  }
  func.func @transform_2(%arg0: i32, %arg1: i32) -> (i32, i32) {
    %c0_i32 = arith.constant 0 : i32
    %c0_i32_0 = arith.constant 0 : i32
    return %arg0, %c0_i32 : i32, i32
  }
}

</mosaic_0001>

<bundles_post_ra>
// kernel: tpu_custom_call.1
= control target key start
LH: loop header
LB: loop body
LE: loop exit
PB: predicated region body
PF: predicated region fallthrough
CT: control target
= control target key end

     0   :  { %7 = vsyncpa [#allocation3], 0  ;;  %s227_s0 = inlined_call_operand.hbm [shape: f32[16,128], index: 0, kind: input, shape index: {}]   ;;  %s228_s1 = inlined_call_operand.hbm [shape: f32[16,128], index: 1, kind: input, shape index: {}]   ;;  %s229_s2 = inlined_call_operand.hbm [shape: f32[8,128], index: 2, kind: output, shape index: {}]  }
   0x1   :  { %8 = vsyncpa [#allocation6], 0 }
   0x2   :  { %9 = vsyncpa [#allocation4], 0  ;;  %s171_s9 = smov [#allocation2]   ;;  %s99_s13 = scalar_lea.hbm %s227_s0, 256 }
   0x3   :  { %s19_s10 = sshll.u32 %s171_s9, 4  ;;  %p100_p0 = scmp.ne.s32.totalorder %s227_s0, %s99_s13  ;;  %s20_s10 = int_to_ptr.vmem [resolvable:$true] %s19_s10 }
   0x4   :  { %p103_p1 = scmp.lt.u32.totalorder %s99_s13, %s227_s0 }
   0x6   :  { %p105_p2 = pnand %p103_p1, %p100_p0 }
   0x8   :  { %108 = shalt.err (!%p105_p2)
}
   0x9   :  { %s109_s18 = scalar_lea.vmem %s20_s10, 256  ;;  %p114_p4 = scmp.lt.s32.totalorder %s20_s10, %s20_s10 }
   0xa   :  { %p110_p3 = scmp.ne.s32.totalorder %s20_s10, %s109_s18  ;;  %p115_p5 = scmp.lt.s32.totalorder %s109_s18, %s109_s18 }
   0xc   :  { %p116_p6 = por %p115_p5, %p114_p4 }
   0xe   :  { %p117_p7 = pnand %p116_p6, %p110_p3 }
  0x10   :  { %120 = shalt.err (!%p117_p7)
}
  0x11   :  { %s172_s19 = smov 128   ;;  %s173_s20 = smov 8  }
  0x12   :  { %25 = dma.hbm_to_vmem [thread:$0]  %s227_s0, 256, %s20_s10, [#allocation3], %s172_s19, %s172_s19, %s173_s20  }
  0x13   :  { %s174_s23 = smov [#allocation5]   ;;  %s121_s27 = scalar_lea.hbm %s228_s1, 256 }
  0x14   :  { %s35_s24 = sshll.u32 %s174_s23, 4  ;;  %p122_p8 = scmp.ne.s32.totalorder %s228_s1, %s121_s27  ;;  %s36_s24 = int_to_ptr.vmem [resolvable:$true] %s35_s24 }
  0x15   :  { %p125_p9 = scmp.lt.u32.totalorder %s121_s27, %s228_s1 }
  0x17   :  { %p127_p10 = pnand %p125_p9, %p122_p8 }
  0x19   :  { %130 = shalt.err (!%p127_p10)
}
  0x1a   :  { %s131_s4 = scalar_lea.vmem %s36_s24, 256  ;;  %p136_p12 = scmp.lt.s32.totalorder %s36_s24, %s36_s24 }
  0x1b   :  { %p132_p11 = scmp.ne.s32.totalorder %s36_s24, %s131_s4  ;;  %p137_p13 = scmp.lt.s32.totalorder %s131_s4, %s131_s4 }
  0x1d   :  { %p138_p0 = por %p137_p13, %p136_p12 }
  0x1f   :  { %p139_p1 = pnand %p138_p0, %p132_p11 }
  0x21   :  { %142 = shalt.err (!%p139_p1)
}
  0x22   :  { %41 = dma.hbm_to_vmem [thread:$0]  %s228_s1, 256, %s36_s24, [#allocation6], %s172_s19, %s172_s19, %s173_s20  }
  0x23   :  { %165 = dma.done.wait [#allocation3], 256  }
  0x24   :  { %166 = vsyncadd [#allocation3], 4294967040 }
  0x25   :  { %167 = dma.done.wait [#allocation6], 256  }
  0x26   :  { %168 = vsyncadd [#allocation6], 4294967040  ;;  %v59_v0 = vld [vmem:[#allocation5] sm:$0xff]  ;;  %v60_v1 = vld [vmem:[#allocation5 + $0x8] sm:$0xff]  ;;  %s175_s6 = smov [#allocation7]  }
  0x27   :  { %v61_v2 = vmul.f32 2.0, %v59_v0  ;;  %v57_v3 = vld [vmem:[#allocation2] sm:$0xff]  ;;  %v62_v4 = vmul.f32 2.0, %v60_v1  ;;  %v58_v5 = vld [vmem:[#allocation2 + $0x8] sm:$0xff]  ;;  %s81_s1 = sshll.u32 %s175_s6, 4  ;;  %s82_s1 = int_to_ptr.vmem [resolvable:$true] %s81_s1 }
  0x28   :  { %s143_s7 = scalar_lea.vmem %s82_s1, 128  ;;  %p148_p3 = scmp.lt.s32.totalorder %s82_s1, %s82_s1 }
  0x29   :  { %v91_v6 = vadd.f32 -1.0, %v61_v2  ;;  %v92_v7 = vadd.f32 -1.0, %v62_v4  ;;  %p144_p2 = scmp.ne.s32.totalorder %s82_s1, %s143_s7  ;;  %p149_p4 = scmp.lt.s32.totalorder %s143_s7, %s143_s7 }
  0x2b   :  { %v65_v8 = vmul.f32 %v91_v6, %v57_v3  ;;  %v66_v9 = vmul.f32 %v92_v7, %v58_v5  ;;  %p150_p5 = por %p149_p4, %p148_p3 }
  0x2d   :  { %v67_v10 = vsub.f32 1.0, %v65_v8  ;;  %v68_v11 = vsub.f32 1.0, %v66_v9  ;;  %p151_p6 = pnand %p150_p5, %p144_p2 }
  0x2f   :  { %v69_v12 = vmax.f32 %v67_v10, 0.0  ;;  %v70_v13 = vmax.f32 %v68_v11, 0.0 }
  0x31   :  { %v72_v14 = vadd.f32 %v70_v13, %v69_v12 }
  0x33   :  { %74 = vst [vmem:[#allocation7] sm:$0xff] %v72_v14 }
  0x34   :  { %154 = shalt.err (!%p151_p6)
}
  0x35   :  { %s155_s10 = scalar_lea.hbm %s229_s2, 128 }
  0x36   :  { %p156_p7 = scmp.ne.s32.totalorder %s229_s2, %s155_s10  ;;  %p159_p8 = scmp.lt.u32.totalorder %s155_s10, %s229_s2 }
  0x38   :  { %p161_p9 = pnand %p159_p8, %p156_p7 }
  0x3a   :  { %164 = shalt.err (!%p161_p9)
}
  0x3b   :  { %84 = dma.vmem_to_hbm [thread:$0]  %s82_s1, 128, %s229_s2, [#allocation4]  }
  0x3c   :  { %169 = dma.done.wait [#allocation4], 128  }
  0x3d   :  { %170 = vsyncadd [#allocation4], 4294967168 }
  0x3e   :  { %88 = vsyncpa [#allocation3], 1 }
  0x3f   :  { %89 = vsyncpa [#allocation6], 1 }
  0x40   :  { %90 = vsyncpa [#allocation4], 1 }

</bundles_post_ra>
